<compile_context>
chip_gen: v6e
topology: v6e:2x2x1
jax: 0.10.0
libtpu: 0.0.40
codegen_flags: <defaults>
</compile_context>

<pallas_src>
import functools

import jax
import jax.numpy as jnp
from jax.experimental import pallas as pl
from jax.experimental.pallas import tpu as pltpu


# ----------------------- glue: pad / unfold / fold / conv ------------------

def same_pad(x, k, s):
    """torch `same_padding` for a square kernel k, stride s (NCHW)."""
    B, C, H, W = x.shape
    out_h = -(-H // s)
    out_w = -(-W // s)
    pad_r = max(0, (out_h - 1) * s + k - H)
    pad_c = max(0, (out_w - 1) * s + k - W)
    top, left = pad_r // 2, pad_c // 2
    bottom, right = pad_r - top, pad_c - left
    xp = jnp.pad(x, ((0, 0), (0, 0), (top, bottom), (left, right)))
    return xp, (left, right, top, bottom)


def unfold_patches(xp, k, s):
    """torch.nn.Unfold on an already padded NCHW tensor.

    Returns [B, L, C*k*k] with feature ordering (c, kh, kw) and L row-major
    over output spatial positions (matches torch semantics after the
    view/permute done in the PyTorch module).
    """
    B, C, Hp, Wp = xp.shape
    oh = (Hp - k) // s + 1
    ow = (Wp - k) // s + 1
    cols = []
    for ki in range(k):
        for kj in range(k):
            cols.append(xp[:, :, ki:ki + s * oh:s, kj:kj + s * ow:s])
    p = jnp.stack(cols, axis=0).reshape(k, k, B, C, oh, ow)
    p = p.transpose(2, 4, 5, 3, 0, 1)            # [B, oh, ow, C, k, k]
    return p.reshape(B, oh * ow, C * k * k), (oh, ow)


def fold_add(Y, out_hw, k, s, pad):
    """torch.nn.functional.fold (scatter-add of patches), NCHW output."""
    B, L, CKK = Y.shape
    C = CKK // (k * k)
    H, W = out_hw
    n_h = (H + 2 * pad - k) // s + 1
    n_w = (W + 2 * pad - k) // s + 1
    assert n_h * n_w == L, "fold block count mismatch"
    Yr = Y.reshape(B, n_h, n_w, C, k, k)
    out = jnp.zeros((B, C, H + 2 * pad, W + 2 * pad), Y.dtype)
    for ki in range(k):
        for kj in range(k):
            out = out.at[:, :, ki:ki + s * n_h:s, kj:kj + s * n_w:s].add(
                Yr[:, :, :, :, ki, kj].transpose(0, 3, 1, 2))
    return out[:, :, pad:pad + H, pad:pad + W]


def conv2d_nchw(x, w, b, stride=1, padding=0):
    out = jax.lax.conv_general_dilated(
        x, w, window_strides=(stride, stride),
        padding=((padding, padding), (padding, padding)),
        dimension_numbers=("NCHW", "OIHW", "NCHW"))
    return out + b[None, :, None, None]


def _round_up(x, m):
    return ((x + m - 1) // m) * m


def _pad_to(a, shape):
    pads = tuple((0, t - s) for s, t in zip(a.shape, shape))
    if all(p == (0, 0) for p in pads):
        return a
    return jnp.pad(a, pads)


# ------------------- Pallas kernel: fc1/fc2 + patch attention --------------

def _pnab_attn_kernel(p28_ref, pk_ref, pv_ref, w1_ref, b1_ref, w2_ref, b2_ref,
                      y_ref, wi_ref, m_ref, l_ref, *, scale, l2):
    kv = pl.program_id(1)
    bt, l1, ckkp = p28_ref.shape
    tk = pk_ref.shape[1]
    fp = w1_ref.shape[1]

    # --- first kv tile of this batch block: fc1 projection (cached) + init ---
    @pl.when(kv == 0)
    def _init():
        # merge batch into the M dim so the fc1 matmul fills more MXU rows
        q = p28_ref[...].reshape(bt * l1, ckkp)
        wi = jnp.dot(q, w1_ref[...], preferred_element_type=jnp.float32)
        # softmax scale folded in here (once per batch block, f32, before the
        # bf16 cast) so the per-kv-step [bt, L1, tk] multiply disappears.
        wi = jnp.maximum(wi + b1_ref[...], 0.0) * scale
        wi_ref[...] = wi.reshape(bt, l1, fp).astype(wi_ref.dtype)
        m_ref[...] = jnp.full_like(m_ref, -jnp.inf)
        l_ref[...] = jnp.zeros_like(l_ref)
        y_ref[...] = jnp.zeros_like(y_ref)   # accumulate directly in the output

    # --- fc2 projection of the current kv tile (batch merged into M) ---
    k_in = pk_ref[...].reshape(bt * tk, ckkp)
    xi = jnp.dot(k_in, w2_ref[...], preferred_element_type=jnp.float32)
    xi = jnp.maximum(xi + b2_ref[...], 0.0)
    xi = xi.reshape(bt, tk, fp).astype(jnp.bfloat16)

    # --- scores + online softmax update (f32 softmax path, bf16 MXU ops) ---
    s = jnp.einsum("bqf,bkf->bqk", wi_ref[...], xi,
                   preferred_element_type=jnp.float32)
    if l2 % tk != 0:
        # mask zero-padded key positions; iota/compare kept to a (1,1,tk) row
        # so only the select touches the full [bt, L1, tk] tile.
        k_ids = kv * tk + jax.lax.broadcasted_iota(jnp.int32, (1, 1, tk), 2)
        s = jnp.where(k_ids < l2, s, -jnp.inf)

    m_prev = m_ref[...]
    m_new = jnp.maximum(m_prev, jnp.max(s, axis=2, keepdims=True))
    alpha = jnp.exp(m_prev - m_new)
    p = jnp.exp(s - m_new)
    l_ref[...] = alpha * l_ref[...] + jnp.sum(p, axis=2, keepdims=True)
    y_ref[...] = alpha * y_ref[...] + jnp.einsum(
        "bqk,bkd->bqd", p.astype(jnp.bfloat16), pv_ref[...],
        preferred_element_type=jnp.float32)
    m_ref[...] = m_new

    # --- last kv tile: deferred normalization (reciprocal lands on EUP) ---
    @pl.when(kv == pl.num_programs(1) - 1)
    def _finalize():
        y_ref[...] = y_ref[...] * pl.reciprocal(l_ref[...], approx=True)


def pnab_attention(p28, p112_2, p112, w1, b1, w2, b2, scale,
                   *, block_kv=256, batch_block=None):
    B, L1, CKK = p28.shape
    L2 = p112.shape[1]
    F = w1.shape[1]

    # Keep B // bt >= 2 whenever possible so the "parallel" batch axis stays
    # shardable across both TensorCores on v7x; bt > 1 only when batch allows.
    if batch_block is not None:
        bt = batch_block
    else:
        bt = 2 if (B % 2 == 0 and B >= 4) else 1
    assert B % bt == 0

    ckkp = _round_up(CKK, 128)           # 196 -> 256
    fp = _round_up(F, 128)               # 49  -> 128
    tk = min(block_kv, _round_up(L2, 128))
    l2p = _round_up(L2, tk)

    bf = jnp.bfloat16
    p28_p = _pad_to(p28, (B, L1, ckkp)).astype(bf)
    pk_p = _pad_to(p112_2, (B, l2p, ckkp)).astype(bf)
    pv_p = _pad_to(p112, (B, l2p, ckkp)).astype(bf)
    w1_p = _pad_to(w1, (ckkp, fp)).astype(bf)
    w2_p = _pad_to(w2, (ckkp, fp)).astype(bf)
    b1_p = _pad_to(b1.reshape(1, F), (1, fp)).astype(jnp.float32)
    b2_p = _pad_to(b2.reshape(1, F), (1, fp)).astype(jnp.float32)

    # explicit VMEM budget (double-buffered inputs/outputs + scratch), with
    # (8,128) padding accounted for and generous headroom; capped for v7x.
    def _p8(n):
        return _round_up(max(n, 1), 8)
    est = 0
    est += 2 * bt * _p8(L1) * ckkp * 2            # q blocks (bf16, 2 bufs)
    est += 2 * 2 * bt * _p8(tk) * ckkp * 2        # k + v blocks
    est += 2 * 2 * ckkp * fp * 2                  # w1 + w2
    est += 2 * 2 * 8 * fp * 4                     # biases (padded rows)
    est += 2 * bt * _p8(L1) * ckkp * 4            # f32 output block (resident)
    est += bt * _p8(L1) * fp * 2                  # cached fc1 output
    est += 2 * bt * _p8(L1) * 128 * 4             # m / l scratch (lane-padded)
    vmem_limit = int(min(max(2 * est + (4 << 20), 16 << 20), 64 << 20))

    kern = functools.partial(_pnab_attn_kernel, scale=float(scale), l2=L2)
    out = pl.pallas_call(
        kern,
        out_shape=jax.ShapeDtypeStruct((B, L1, ckkp), jnp.float32),
        grid_spec=pltpu.PrefetchScalarGridSpec(
            num_scalar_prefetch=0,
            grid=(B // bt, l2p // tk),
            in_specs=[
                pl.BlockSpec((bt, L1, ckkp), lambda b, k: (b, 0, 0)),   # queries
                pl.BlockSpec((bt, tk, ckkp), lambda b, k: (b, k, 0)),   # keys
                pl.BlockSpec((bt, tk, ckkp), lambda b, k: (b, k, 0)),   # values
                pl.BlockSpec((ckkp, fp), lambda b, k: (0, 0)),          # fc1 w
                pl.BlockSpec((1, fp), lambda b, k: (0, 0)),             # fc1 b
                pl.BlockSpec((ckkp, fp), lambda b, k: (0, 0)),          # fc2 w
                pl.BlockSpec((1, fp), lambda b, k: (0, 0)),             # fc2 b
            ],
            # output block index ignores k -> resident across the kv axis,
            # used directly as the online-softmax accumulator.
            out_specs=pl.BlockSpec((bt, L1, ckkp), lambda b, k: (b, 0, 0)),
            scratch_shapes=[
                pltpu.VMEM((bt, L1, fp), jnp.bfloat16),    # cached fc1 output
                pltpu.VMEM((bt, L1, 1), jnp.float32),      # running max
                pltpu.VMEM((bt, L1, 1), jnp.float32),      # running sum
            ]),
        compiler_params=pltpu.CompilerParams(
            dimension_semantics=("parallel", "arbitrary"),
            vmem_limit_bytes=vmem_limit),
    )(p28_p, pk_p, pv_p, w1_p, b1_p, w2_p, b2_p)
    return out[:, :, :CKK]


def attn_reference(p28, p112_2, p112, w1, b1, w2, b2, scale):
    """Pure-JAX reference with the same numerics as the kernel
    (bf16 MXU operands, f32 accumulation / softmax, scale folded into wi)."""
    bf, f32 = jnp.bfloat16, jnp.float32
    b1r = b1.reshape(1, 1, -1)
    b2r = b2.reshape(1, 1, -1)
    wi = jnp.einsum("blk,kf->blf", p28.astype(bf), w1.astype(bf),
                    preferred_element_type=f32)
    wi = (jnp.maximum(wi + b1r, 0.0) * scale).astype(bf)
    xi = jnp.einsum("blk,kf->blf", p112_2.astype(bf), w2.astype(bf),
                    preferred_element_type=f32)
    xi = jnp.maximum(xi + b2r, 0.0).astype(bf)
    s = jnp.einsum("blf,bmf->blm", wi, xi, preferred_element_type=f32)
    a = jax.nn.softmax(s, axis=-1)
    return jnp.einsum("blm,bmk->blk", a.astype(bf), p112.astype(bf),
                      preferred_element_type=f32)


# ----------------------------- PNAB forward ---------------------------------

def pnab_forward(x, params, ksize=7, stride_1=4, stride_2=1,
                 softmax_scale=10.0, attn_fn=pnab_attention):
    B, C, H, W = x.shape
    b1 = conv2d_nchw(x, params["g_w"], params["g_b"], padding=1)          # self.g
    b2 = conv2d_nchw(x, params["theta_w"], params["theta_b"], padding=0)  # self.theta
    b3 = b1
    # TODO(synk): thr_conv / bias_conv / self.W outputs are never used in the
    # PyTorch forward's return value, so they are not computed here.

    b1p, _ = same_pad(b1, ksize, stride_1)
    p28, _ = unfold_patches(b1p, ksize, stride_1)        # [B, L1, C*k*k]
    b2p, _ = same_pad(b2, ksize, stride_2)
    p112, _ = unfold_patches(b2p, ksize, stride_2)       # [B, L2, C*k*k]
    b3p, pads_s2 = same_pad(b3, ksize, stride_2)
    p112_2, _ = unfold_patches(b3p, ksize, stride_2)     # [B, L2, C*k*k]
    fold_pad = pads_s2[0]   # paddings[0] of the stride_2 "same" padding
    # TODO(synk): the stride_2=1 unfold replicates every pixel k^2 times in
    # HBM; a future structural change could DMA-assemble k/v tiles from the
    # dense map inside the kernel instead.

    Y = attn_fn(p28, p112_2, p112,
                params["fc1_w"], params["fc1_b"][None, :],
                params["fc2_w"], params["fc2_b"][None, :],
                softmax_scale)                           # [B, L1, C*k*k]

    zi = fold_add(Y, (H, W), ksize, stride_1, fold_pad)
    mask = fold_add(jnp.ones_like(Y), (H, W), ksize, stride_1, fold_pad)
    mask = mask + (mask == 0.0).astype(mask.dtype)
    return zi / mask


# --------------------------------- main --------------------------------------

if __name__ == "__main__":
    B, C, H, W = 2, 4, 16, 16
    ksize, stride_1, stride_2, softmax_scale = 7, 4, 1, 10.0
    CKK = C * ksize * ksize
    F = (ksize ** 2 * C) // 4

    key = jax.random.PRNGKey(0)
    ks = jax.random.split(key, 9)
    params = {
        "g_w": jax.random.normal(ks[0], (C, C, 3, 3), jnp.float32) * 0.1,
        "g_b": jax.random.normal(ks[1], (C,), jnp.float32) * 0.1,
        "theta_w": jax.random.normal(ks[2], (C, C, 1, 1), jnp.float32) * 0.1,
        "theta_b": jax.random.normal(ks[3], (C,), jnp.float32) * 0.1,
        # nn.Linear weights stored transposed: [in_features, out_features]
        "fc1_w": jax.random.normal(ks[4], (CKK, F), jnp.float32) * 0.05,
        "fc1_b": jax.random.normal(ks[5], (F,), jnp.float32) * 0.05,
        "fc2_w": jax.random.normal(ks[6], (CKK, F), jnp.float32) * 0.05,
        "fc2_b": jax.random.normal(ks[7], (F,), jnp.float32) * 0.05,
    }
    x = jax.random.normal(ks[8], (B, C, H, W), jnp.float32)

    fwd_kernel = jax.jit(functools.partial(
        pnab_forward, ksize=ksize, stride_1=stride_1, stride_2=stride_2,
        softmax_scale=softmax_scale, attn_fn=pnab_attention))
    fwd_ref = jax.jit(functools.partial(
        pnab_forward, ksize=ksize, stride_1=stride_1, stride_2=stride_2,
        softmax_scale=softmax_scale, attn_fn=attn_reference))

    out = jax.block_until_ready(fwd_kernel(x, params))
    assert out.shape == (B, C, H, W), out.shape

    # sanity-check the Pallas attention core against a numerics-matched
    # pure-JAX reference (same bf16-operand / f32-accumulation recipe)
    out_ref = jax.block_until_ready(fwd_ref(x, params))
    max_err = float(jnp.max(jnp.abs(out - out_ref)))
    assert max_err < 2e-2, f"max abs err {max_err}"

    print("KERNEL_OK")
</pallas_src>

<mosaic_0001>
module attributes {stable_mosaic.version = 11 : i64} {
  func.func @_pnab_attn_kernel(%arg0: i32, %arg1: i32, %arg2: memref<1x16x256xbf16, #tpu.memory_space<vmem>>, %arg3: memref<1x256x256xbf16, #tpu.memory_space<vmem>>, %arg4: memref<1x256x256xbf16, #tpu.memory_space<vmem>>, %arg5: memref<256x128xbf16, #tpu.memory_space<vmem>>, %arg6: memref<1x128xf32, #tpu.memory_space<vmem>>, %arg7: memref<256x128xbf16, #tpu.memory_space<vmem>>, %arg8: memref<1x128xf32, #tpu.memory_space<vmem>>, %arg9: memref<1x16x256xf32, #tpu.memory_space<vmem>>, %arg10: memref<1x16x128xbf16, #tpu.memory_space<vmem>>, %arg11: memref<1x16x1xf32, #tpu.memory_space<vmem>>, %arg12: memref<1x16x1xf32, #tpu.memory_space<vmem>>) attributes {dimension_semantics = [#tpu.dimension_semantics<parallel>, #tpu.dimension_semantics<arbitrary>], iteration_bounds = array<i64: 2, 1>, scalar_prefetch = 0 : i64, scratch_operands = 3 : i64, tpu.core_type = #tpu.core_type<tc>, window_params = [{transform_indices = @transform_0, window_bounds = array<i64: 1, 16, 256>}, {transform_indices = @transform_1, window_bounds = array<i64: 1, 256, 256>}, {transform_indices = @transform_2, window_bounds = array<i64: 1, 256, 256>}, {pipeline_mode = #tpu.pipeline_mode<synchronous>, transform_indices = @transform_3, window_bounds = array<i64: 256, 128>}, {pipeline_mode = #tpu.pipeline_mode<synchronous>, transform_indices = @transform_4, window_bounds = array<i64: 1, 128>}, {pipeline_mode = #tpu.pipeline_mode<synchronous>, transform_indices = @transform_5, window_bounds = array<i64: 256, 128>}, {pipeline_mode = #tpu.pipeline_mode<synchronous>, transform_indices = @transform_6, window_bounds = array<i64: 1, 128>}, {transform_indices = @transform_7, window_bounds = array<i64: 1, 16, 256>}]} {
    %c0_i32 = arith.constant 0 : i32
    %0 = arith.cmpi eq, %arg1, %c0_i32 : i32
    %1 = arith.extui %0 : i1 to i32
    %c0_i32_0 = arith.constant 0 : i32
    %2 = arith.cmpi ne, %1, %c0_i32_0 : i32
    scf.if %2 {
      %c0_38 = arith.constant 0 : index
      %c0_39 = arith.constant 0 : index
      %c0_40 = arith.constant 0 : index
      %43 = vector.load %arg2[%c0_38, %c0_39, %c0_40] : memref<1x16x256xbf16, #tpu.memory_space<vmem>>, vector<1x16x256xbf16>
      %44 = vector.shape_cast %43 : vector<1x16x256xbf16> to vector<16x256xbf16>
      %c0_41 = arith.constant 0 : index
      %c0_42 = arith.constant 0 : index
      %45 = vector.load %arg5[%c0_41, %c0_42] : memref<256x128xbf16, #tpu.memory_space<vmem>>, vector<256x128xbf16>
      %cst_43 = arith.constant dense<0.000000e+00> : vector<16x128xf32>
      %46 = tpu.matmul %44, %45, %cst_43 {dimension_numbers = #tpu.dot_dimension_numbers<[1], [0], [0], [1], [0, 0, 1, 1], [], []>} : vector<16x256xbf16>, vector<256x128xbf16>, vector<16x128xf32> -> vector<16x128xf32>
      %c0_44 = arith.constant 0 : index
      %c0_45 = arith.constant 0 : index
      %47 = vector.load %arg6[%c0_44, %c0_45] : memref<1x128xf32, #tpu.memory_space<vmem>>, vector<1x128xf32>
      %48 = vector.broadcast %47 : vector<1x128xf32> to vector<16x128xf32>
      %49 = arith.addf %46, %48 : vector<16x128xf32>
      %cst_46 = arith.constant 0.000000e+00 : f32
      %50 = vector.broadcast %cst_46 : f32 to vector<16x128xf32>
      %51 = arith.maximumf %49, %50 : vector<16x128xf32>
      %cst_47 = arith.constant 1.000000e+01 : f32
      %52 = vector.broadcast %cst_47 : f32 to vector<16x128xf32>
      %53 = arith.mulf %51, %52 : vector<16x128xf32>
      %54 = vector.shape_cast %53 : vector<16x128xf32> to vector<1x16x128xf32>
      %55 = arith.truncf %54 : vector<1x16x128xf32> to vector<1x16x128xbf16>
      %c0_48 = arith.constant 0 : index
      %c0_49 = arith.constant 0 : index
      %c0_50 = arith.constant 0 : index
      %56 = vector.load %arg10[%c0_48, %c0_49, %c0_50] : memref<1x16x128xbf16, #tpu.memory_space<vmem>>, vector<1x16x128xbf16>
      tpu.vector_store %arg10[%c0_48, %c0_49, %c0_50], %55 {strides = array<i32>} : memref<1x16x128xbf16, #tpu.memory_space<vmem>>, vector<1x16x128xbf16>,
      %cst_51 = arith.constant 0xFF800000 : f32
      %57 = vector.broadcast %cst_51 : f32 to vector<1x16x1xf32>
      %c0_52 = arith.constant 0 : index
      %c0_53 = arith.constant 0 : index
      %c0_54 = arith.constant 0 : index
      %58 = vector.load %arg11[%c0_52, %c0_53, %c0_54] : memref<1x16x1xf32, #tpu.memory_space<vmem>>, vector<1x16x1xf32>
      tpu.vector_store %arg11[%c0_52, %c0_53, %c0_54], %57 {strides = array<i32>} : memref<1x16x1xf32, #tpu.memory_space<vmem>>, vector<1x16x1xf32>,
      %cst_55 = arith.constant 0.000000e+00 : f32
      %59 = vector.broadcast %cst_55 : f32 to vector<1x16x1xf32>
      %c0_56 = arith.constant 0 : index
      %c0_57 = arith.constant 0 : index
      %c0_58 = arith.constant 0 : index
      %60 = vector.load %arg12[%c0_56, %c0_57, %c0_58] : memref<1x16x1xf32, #tpu.memory_space<vmem>>, vector<1x16x1xf32>
      tpu.vector_store %arg12[%c0_56, %c0_57, %c0_58], %59 {strides = array<i32>} : memref<1x16x1xf32, #tpu.memory_space<vmem>>, vector<1x16x1xf32>,
      %cst_59 = arith.constant 0.000000e+00 : f32
      %61 = vector.broadcast %cst_59 : f32 to vector<1x16x256xf32>
      %c0_60 = arith.constant 0 : index
      %c0_61 = arith.constant 0 : index
      %c0_62 = arith.constant 0 : index
      %62 = vector.load %arg9[%c0_60, %c0_61, %c0_62] : memref<1x16x256xf32, #tpu.memory_space<vmem>>, vector<1x16x256xf32>
      tpu.vector_store %arg9[%c0_60, %c0_61, %c0_62], %61 {strides = array<i32>} : memref<1x16x256xf32, #tpu.memory_space<vmem>>, vector<1x16x256xf32>,
    } else {
    }
    %c0 = arith.constant 0 : index
    %c0_1 = arith.constant 0 : index
    %c0_2 = arith.constant 0 : index
    %3 = vector.load %arg3[%c0, %c0_1, %c0_2] : memref<1x256x256xbf16, #tpu.memory_space<vmem>>, vector<1x256x256xbf16>
    %4 = vector.shape_cast %3 : vector<1x256x256xbf16> to vector<256x256xbf16>
    %c0_3 = arith.constant 0 : index
    %c0_4 = arith.constant 0 : index
    %5 = vector.load %arg7[%c0_3, %c0_4] : memref<256x128xbf16, #tpu.memory_space<vmem>>, vector<256x128xbf16>
    %cst = arith.constant dense<0.000000e+00> : vector<256x128xf32>
    %6 = tpu.matmul %4, %5, %cst {dimension_numbers = #tpu.dot_dimension_numbers<[1], [0], [0], [1], [0, 0, 1, 1], [], []>} : vector<256x256xbf16>, vector<256x128xbf16>, vector<256x128xf32> -> vector<256x128xf32>
    %c0_5 = arith.constant 0 : index
    %c0_6 = arith.constant 0 : index
    %7 = vector.load %arg8[%c0_5, %c0_6] : memref<1x128xf32, #tpu.memory_space<vmem>>, vector<1x128xf32>
    %8 = vector.broadcast %7 : vector<1x128xf32> to vector<256x128xf32>
    %9 = arith.addf %6, %8 : vector<256x128xf32>
    %cst_7 = arith.constant 0.000000e+00 : f32
    %10 = vector.broadcast %cst_7 : f32 to vector<256x128xf32>
    %11 = arith.maximumf %9, %10 : vector<256x128xf32>
    %12 = vector.shape_cast %11 : vector<256x128xf32> to vector<1x256x128xf32>
    %13 = arith.truncf %12 : vector<1x256x128xf32> to vector<1x256x128xbf16>
    %c0_8 = arith.constant 0 : index
    %c0_9 = arith.constant 0 : index
    %c0_10 = arith.constant 0 : index
    %14 = vector.load %arg10[%c0_8, %c0_9, %c0_10] : memref<1x16x128xbf16, #tpu.memory_space<vmem>>, vector<1x16x128xbf16>
    "tpu.trace_start"() <{level = 10 : i32, message = "bqf,bkf->bqk"}> : () -> ()
    %cst_11 = arith.constant dense<0.000000e+00> : vector<1x16x256xf32>
    %15 = tpu.matmul %14, %13, %cst_11 {dimension_numbers = #tpu.dot_dimension_numbers<[2], [2], [1], [1], [0, 0, 0, 1, 1, 1], [0], [0]>} : vector<1x16x128xbf16>, vector<1x256x128xbf16>, vector<1x16x256xf32> -> vector<1x16x256xf32>
    "tpu.trace_stop"() : () -> ()
    %c0_12 = arith.constant 0 : index
    %c0_13 = arith.constant 0 : index
    %c0_14 = arith.constant 0 : index
    %16 = vector.load %arg11[%c0_12, %c0_13, %c0_14] : memref<1x16x1xf32, #tpu.memory_space<vmem>>, vector<1x16x1xf32>
    %cst_15 = arith.constant dense<0xFF800000> : vector<1x16xf32>
    %17 = vector.multi_reduction <maximumf>, %15, %cst_15 [2] : vector<1x16x256xf32> to vector<1x16xf32>
    %18 = vector.shape_cast %17 : vector<1x16xf32> to vector<1x16x1xf32>
    %19 = arith.maximumf %16, %18 : vector<1x16x1xf32>
    %20 = arith.subf %16, %19 : vector<1x16x1xf32>
    %21 = math.exp %20 : vector<1x16x1xf32>
    %22 = vector.broadcast %19 : vector<1x16x1xf32> to vector<1x16x256xf32>
    %23 = arith.subf %15, %22 : vector<1x16x256xf32>
    %24 = math.exp %23 : vector<1x16x256xf32>
    %c0_16 = arith.constant 0 : index
    %c0_17 = arith.constant 0 : index
    %c0_18 = arith.constant 0 : index
    %25 = vector.load %arg12[%c0_16, %c0_17, %c0_18] : memref<1x16x1xf32, #tpu.memory_space<vmem>>, vector<1x16x1xf32>
    %26 = arith.mulf %21, %25 : vector<1x16x1xf32>
    %cst_19 = arith.constant dense<0.000000e+00> : vector<1x16xf32>
    %27 = vector.multi_reduction <add>, %24, %cst_19 [2] : vector<1x16x256xf32> to vector<1x16xf32>
    %28 = vector.shape_cast %27 : vector<1x16xf32> to vector<1x16x1xf32>
    %29 = arith.addf %26, %28 : vector<1x16x1xf32>
    %c0_20 = arith.constant 0 : index
    %c0_21 = arith.constant 0 : index
    %c0_22 = arith.constant 0 : index
    %30 = vector.load %arg12[%c0_20, %c0_21, %c0_22] : memref<1x16x1xf32, #tpu.memory_space<vmem>>, vector<1x16x1xf32>
    tpu.vector_store %arg12[%c0_20, %c0_21, %c0_22], %29 {strides = array<i32>} : memref<1x16x1xf32, #tpu.memory_space<vmem>>, vector<1x16x1xf32>,
    %c0_23 = arith.constant 0 : index
    %c0_24 = arith.constant 0 : index
    %c0_25 = arith.constant 0 : index
    %31 = vector.load %arg9[%c0_23, %c0_24, %c0_25] : memref<1x16x256xf32, #tpu.memory_space<vmem>>, vector<1x16x256xf32>
    %32 = vector.broadcast %21 : vector<1x16x1xf32> to vector<1x16x256xf32>
    %33 = arith.mulf %32, %31 : vector<1x16x256xf32>
    %34 = arith.truncf %24 : vector<1x16x256xf32> to vector<1x16x256xbf16>
    %c0_26 = arith.constant 0 : index
    %c0_27 = arith.constant 0 : index
    %c0_28 = arith.constant 0 : index
    %35 = vector.load %arg4[%c0_26, %c0_27, %c0_28] : memref<1x256x256xbf16, #tpu.memory_space<vmem>>, vector<1x256x256xbf16>
    "tpu.trace_start"() <{level = 10 : i32, message = "bqk,bkd->bqd"}> : () -> ()
    %cst_29 = arith.constant dense<0.000000e+00> : vector<1x16x256xf32>
    %36 = tpu.matmul %34, %35, %cst_29 {dimension_numbers = #tpu.dot_dimension_numbers<[2], [1], [1], [2], [0, 0, 0, 1, 1, 2], [0], [0]>} : vector<1x16x256xbf16>, vector<1x256x256xbf16>, vector<1x16x256xf32> -> vector<1x16x256xf32>
    "tpu.trace_stop"() : () -> ()
    %37 = arith.addf %33, %36 : vector<1x16x256xf32>
    %c0_30 = arith.constant 0 : index
    %c0_31 = arith.constant 0 : index
    %c0_32 = arith.constant 0 : index
    %38 = vector.load %arg9[%c0_30, %c0_31, %c0_32] : memref<1x16x256xf32, #tpu.memory_space<vmem>>, vector<1x16x256xf32>
    tpu.vector_store %arg9[%c0_30, %c0_31, %c0_32], %37 {strides = array<i32>} : memref<1x16x256xf32, #tpu.memory_space<vmem>>, vector<1x16x256xf32>,
    %c0_33 = arith.constant 0 : index
    %c0_34 = arith.constant 0 : index
    %c0_35 = arith.constant 0 : index
    %39 = vector.load %arg11[%c0_33, %c0_34, %c0_35] : memref<1x16x1xf32, #tpu.memory_space<vmem>>, vector<1x16x1xf32>
    tpu.vector_store %arg11[%c0_33, %c0_34, %c0_35], %19 {strides = array<i32>} : memref<1x16x1xf32, #tpu.memory_space<vmem>>, vector<1x16x1xf32>,
    %c0_i32_36 = arith.constant 0 : i32
    %40 = arith.cmpi eq, %arg1, %c0_i32_36 : i32
    %41 = arith.extui %40 : i1 to i32
    %c0_i32_37 = arith.constant 0 : i32
    %42 = arith.cmpi ne, %41, %c0_i32_37 : i32
    scf.if %42 {
      %c0_38 = arith.constant 0 : index
      %c0_39 = arith.constant 0 : index
      %c0_40 = arith.constant 0 : index
      %43 = vector.load %arg9[%c0_38, %c0_39, %c0_40] : memref<1x16x256xf32, #tpu.memory_space<vmem>>, vector<1x16x256xf32>
      %c0_41 = arith.constant 0 : index
      %c0_42 = arith.constant 0 : index
      %c0_43 = arith.constant 0 : index
      %44 = vector.load %arg12[%c0_41, %c0_42, %c0_43] : memref<1x16x1xf32, #tpu.memory_space<vmem>>, vector<1x16x1xf32>
      %45 = tpu.reciprocal %44 {approx = true} : vector<1x16x1xf32> -> vector<1x16x1xf32>
      %46 = vector.broadcast %45 : vector<1x16x1xf32> to vector<1x16x256xf32>
      %47 = arith.mulf %43, %46 : vector<1x16x256xf32>
      %c0_44 = arith.constant 0 : index
      %c0_45 = arith.constant 0 : index
      %c0_46 = arith.constant 0 : index
      %48 = vector.load %arg9[%c0_44, %c0_45, %c0_46] : memref<1x16x256xf32, #tpu.memory_space<vmem>>, vector<1x16x256xf32>
      tpu.vector_store %arg9[%c0_44, %c0_45, %c0_46], %47 {strides = array<i32>} : memref<1x16x256xf32, #tpu.memory_space<vmem>>, vector<1x16x256xf32>,
    } else {
    }
    return
  }
  func.func @transform_0(%arg0: i32, %arg1: i32) -> (i32, i32, i32) {
    %c0_i32 = arith.constant 0 : i32
    %c0_i32_0 = arith.constant 0 : i32
    %c0_i32_1 = arith.constant 0 : i32
    return %arg0, %c0_i32, %c0_i32_0 : i32, i32, i32
  }
  func.func @transform_1(%arg0: i32, %arg1: i32) -> (i32, i32, i32) {
    %c0_i32 = arith.constant 0 : i32
    %c0_i32_0 = arith.constant 0 : i32
    return %arg0, %arg1, %c0_i32 : i32, i32, i32
  }
  func.func @transform_2(%arg0: i32, %arg1: i32) -> (i32, i32, i32) {
    %c0_i32 = arith.constant 0 : i32
    %c0_i32_0 = arith.constant 0 : i32
    return %arg0, %arg1, %c0_i32 : i32, i32, i32
  }
  func.func @transform_3(%arg0: i32, %arg1: i32) -> (i32, i32) {
    %c0_i32 = arith.constant 0 : i32
    %c0_i32_0 = arith.constant 0 : i32
    %c0_i32_1 = arith.constant 0 : i32
    return %c0_i32, %c0_i32_0 : i32, i32
  }
  func.func @transform_4(%arg0: i32, %arg1: i32) -> (i32, i32) {
    %c0_i32 = arith.constant 0 : i32
    %c0_i32_0 = arith.constant 0 : i32
    %c0_i32_1 = arith.constant 0 : i32
    return %c0_i32, %c0_i32_0 : i32, i32
  }
  func.func @transform_5(%arg0: i32, %arg1: i32) -> (i32, i32) {
    %c0_i32 = arith.constant 0 : i32
    %c0_i32_0 = arith.constant 0 : i32
    %c0_i32_1 = arith.constant 0 : i32
    return %c0_i32, %c0_i32_0 : i32, i32
  }
  func.func @transform_6(%arg0: i32, %arg1: i32) -> (i32, i32) {
    %c0_i32 = arith.constant 0 : i32
    %c0_i32_0 = arith.constant 0 : i32
    %c0_i32_1 = arith.constant 0 : i32
    return %c0_i32, %c0_i32_0 : i32, i32
  }
  func.func @transform_7(%arg0: i32, %arg1: i32) -> (i32, i32, i32) {
    %c0_i32 = arith.constant 0 : i32
    %c0_i32_0 = arith.constant 0 : i32
    %c0_i32_1 = arith.constant 0 : i32
    return %arg0, %c0_i32, %c0_i32_0 : i32, i32, i32
  }
}

</mosaic_0001>

<bundles_post_ra>
// kernel: pnab_forward.1
= control target key start
LH: loop header
LB: loop body
LE: loop exit
PB: predicated region body
PF: predicated region fallthrough
CT: control target
= control target key end

     0   :  { %s2149_s24 = smov 0   ;;  %s2151_s25 = smov 0   ;;  %s2459_s0 = inlined_call_operand.vmem [shape: bf16[2,16,256], index: 0, kind: input, shape index: {}]   ;;  %s2460_s1 = inlined_call_operand.vmem [shape: bf16[2,256,256], index: 1, kind: input, shape index: {}]   ;;  %s2461_s2 = inlined_call_operand.vmem [shape: bf16[2,256,256], index: 2, kind: input, shape index: {}]   ;;  %s2462_s3 = inlined_call_operand.vmem [shape: bf16[256,128], index: 3, kind: input, shape index: {}]   ;;  %s2463_s4 = inlined_call_operand.vmem [shape: f32[1,128], index: 4, kind: input, shape index: {}]   ;;  %s2464_s5 = inlined_call_operand.vmem [shape: bf16[256,128], index: 5, kind: input, shape index: {}]   ;;  %s2465_s6 = inlined_call_operand.vmem [shape: f32[1,128], index: 6, kind: input, shape index: {}]   ;;  %s2466_s7 = inlined_call_operand.vmem [shape: f32[2,16,256], index: 7, kind: output, shape index: {}]  }
   0x1   :  { %s2153_s26 = smov 0  }
   0x2 LB: > { %s29_s27 = sadd.s32 1, %s2100_s25  ;;  %p1628_p0 = scmp.ge.s32.totalorder %s2104_s26, 1  ;;  %s2104_s26 = sphi %s2153_s26, %s17_s26   ;;  %s2100_s25 = sphi %s2151_s25, %s2468_s25   ;;  %s2096_s24 = sphi %s2149_s24, %s2467_s24  }
   0x3   : > { %p31_p1 = scmp.ge.s32.totalorder %s29_s27, 2  ;;  %p285_p2 = scmp.lt.s32.totalorder %s2104_s26, 3 }
   0x5   : > { %s2470_s27 = smov (%p31_p1, %s29_s27), 0  ;;  %p286_p3 = pnand %p1628_p0, %p285_p2 }
   0x6   : > { %p337_p4 = scmp.lt.s32.totalorder (!%p286_p3), %s2096_s24, 1 }
   0x7   : > { %289 = sbr.rel (%p286_p3) target bundleno = 1211 (0x4bb), region = 48 }
   0xc   : > { %v1934_v0 = vld [vmem:[%s2464_s5 + $0x78] sm:$0xff]   ;;  %v1936_v2 = vld [vmem:[%s2464_s5 + $0x70] sm:$0xff]   ;;  %v1938_v4 = vld [vmem:[%s2464_s5 + $0x68] sm:$0xff]   ;;  %s2472_s24 = smov (!%p337_p4, %s2096_s24), 1  ;;  %vm576_vm0 = vcmask 7168  }
   0xd   : > { %v1935_v1 = vld [vmem:[%s2464_s5 + $0x38] sm:$0xff]   ;;  %1775 = vmatprep.subr.bf16.mxu1 %v1934_v0  ;;  %v1937_v3 = vld [vmem:[%s2464_s5 + $0x30] sm:$0xff]   ;;  %v1939_v5 = vld [vmem:[%s2464_s5 + $0x28] sm:$0xff]   ;;  %s1743_s21 = sshll.u32 %s2472_s24, 8  ;;  %s1742_s19 = sshll.u32 %s2472_s24, 4 }
   0xe   : > { %1776 = vmatpush3.bf16.msra.mxu1 %v1935_v1  ;;  %v1940_v6 = vld [vmem:[%s2464_s5 + $0x60] sm:$0xff]   ;;  %v1942_v8 = vld [vmem:[%s2464_s5 + $0x58] sm:$0xff]   ;;  %s2202_s30 = scalar_lea.vmem %s2460_s1, %s1743_s21  ;;  %v1944_v10 = vld [vmem:[%s2464_s5 + $0x50] sm:$0xff]   ;;  %s341_s9 = scalar_lea.vmem %s2459_s0, %s1742_s19 }
   0xf   : > { %1777 = vmatprep.subr.bf16.mxu1 %v1936_v2  ;;  %v1941_v7 = vld [vmem:[%s2464_s5 + $0x20] sm:$0xff]   ;;  %v1943_v9 = vld [vmem:[%s2464_s5 + $0x18] sm:$0xff]   ;;  %v1945_v12 = vld [vmem:[%s2464_s5 + $0x10] sm:$0xff]   ;;  %s2269_s12 = scalar_lea.vmem %s2461_s2, %s1743_s21 }
  0x10   : > { %v1952_v11 = vld [vmem:[%s2202_s30 + $0x4] ss:$8 sps:$4 sm:$0xff]   ;;  %v1950_v17 = vld [vmem:[%s2202_s30] ss:$8 sps:$4 sm:$0xff]   ;;  %v1953_v18 = vld [vmem:[%s2202_s30 + $0x14] ss:$8 sps:$4 sm:$0xff]  }
  0x11   : > { %944 = vmatprep.mubr.bf16.mxu1 %v1952_v11  ;;  %v1946_v13 = vld [vmem:[%s2464_s5 + $0x48] sm:$0xff]   ;;  %v1948_v15 = vld [vmem:[%s2464_s5 + $0x40] sm:$0xff]   ;;  %v1955_v19 = vld [vmem:[%s2202_s30 + $0x10] ss:$8 sps:$4 sm:$0xff]  }
  0x12   : > { %1778 = vmatpush3.bf16.msra.mxu1 %v1937_v3  ;;  %v1947_v14 = vld [vmem:[%s2464_s5 + $0x8] sm:$0xff]   ;;  %v1949_v16 = vld [vmem:[%s2464_s5] sm:$0xff]   ;;  %v1998_v21 = vld [vmem:[%s2462_s3 + $0x78] sm:$0xff]  }
  0x13   : > { %1779 = vmatprep.subr.bf16.mxu1 %v1938_v4  ;;  %v1956_v20 = vld [vmem:[%s2202_s30 + $0x24] ss:$8 sps:$4 sm:$0xff]   ;;  %v1999_v22 = vld [vmem:[%s2462_s3 + $0x38] sm:$0xff]   ;;  %1753 = vmatprep.subr.bf16.mxu0 %v1998_v21  ;;  %v2000_v23 = vld [vmem:[%s2462_s3 + $0x70] sm:$0xff]  }
  0x14   : > { %1754 = vmatpush3.bf16.msra.mxu0 %v1999_v22  ;;  %v2001_v24 = vld [vmem:[%s2462_s3 + $0x30] sm:$0xff]   ;;  %v2002_v25 = vld [vmem:[%s2462_s3 + $0x68] sm:$0xff]   ;;  %v2004_v28 = vld [vmem:[%s2462_s3 + $0x60] sm:$0xff]  }
  0x15   : > { %1755 = vmatprep.subr.bf16.mxu0 %v2000_v23  ;;  %v1958_v26 = vld [vmem:[%s2202_s30 + $0x20] ss:$8 sps:$4 sm:$0xff]   ;;  %v1959_v29 = vld [vmem:[%s2202_s30 + $0x34] ss:$8 sps:$4 sm:$0xff]   ;;  %v1961_v32 = vld [vmem:[%s2202_s30 + $0x30] ss:$8 sps:$4 sm:$0xff]  }
  0x16   : > { %1780 = vmatpush3.bf16.msra.mxu1 %v1939_v5  ;;  %v2003_v27 = vld [vmem:[%s2462_s3 + $0x28] sm:$0xff]   ;;  %v2005_v30 = vld [vmem:[%s2462_s3 + $0x20] sm:$0xff]   ;;  %v2006_v31 = vld [vmem:[%s2462_s3 + $0x58] sm:$0xff]  }
  0x17   : > { %1781 = vmatprep.subr.bf16.mxu1 %v1940_v6  ;;  %v1962_v33 = vld [vmem:[%s2202_s30 + $0x44] ss:$8 sps:$4 sm:$0xff]   ;;  %v2007_v34 = vld [vmem:[%s2462_s3 + $0x18] sm:$0xff]   ;;  %v2008_v35 = vld [vmem:[%s2462_s3 + $0x50] sm:$0xff]  }
  0x18   : > { %1756 = vmatpush3.bf16.msra.mxu0 %v2001_v24  ;;  %v2016_v36 = vld [vmem:[%s341_s9 + $0x4] ss:$8 sps:$4 sm:$0xff]   ;;  %v2009_v37 = vld [vmem:[%s2462_s3 + $0x10] sm:$0xff]   ;;  %v1964_v40 = vld [vmem:[%s2202_s30 + $0x40] ss:$8 sps:$4 sm:$0xff]  }
  0x19   : > { %1757 = vmatprep.subr.bf16.mxu0 %v2002_v25  ;;  %v2010_v38 = vld [vmem:[%s2462_s3 + $0x48] sm:$0xff]   ;;  %553 = vmatprep.mubr.bf16.mxu0 %v2016_v36  ;;  %v2012_v41 = vld [vmem:[%s2462_s3 + $0x40] sm:$0xff]   ;;  %v1965_v42 = vld [vmem:[%s2202_s30 + $0x54] ss:$8 sps:$4 sm:$0xff]  }
  0x1a   : > { %1782 = vmatpush3.bf16.msra.mxu1 %v1941_v7  ;;  %v2011_v39 = vld [vmem:[%s2462_s3 + $0x8] sm:$0xff]   ;;  %v2013_v43 = vld [vmem:[%s2462_s3] sm:$0xff]   ;;  %v1967_v45 = vld [vmem:[%s2202_s30 + $0x50] ss:$8 sps:$4 sm:$0xff]  }
  0x1b   : > { %1783 = vmatprep.subr.bf16.mxu1 %v1942_v8  ;;  %v2014_v44 = vld [vmem:[%s341_s9] ss:$8 sps:$4 sm:$0xff]   ;;  %v1968_v46 = vld [vmem:[%s2202_s30 + $0x64] ss:$8 sps:$4 sm:$0xff]   ;;  %v1971_v48 = vld [vmem:[%s2202_s30 + $0x74] ss:$8 sps:$4 sm:$0xff]  }
  0x1c   : > { %1758 = vmatpush3.bf16.msra.mxu0 %v2003_v27  ;;  %v1970_v47 = vld [vmem:[%s2202_s30 + $0x60] ss:$8 sps:$4 sm:$0xff]   ;;  %v1973_v49 = vld [vmem:[%s2202_s30 + $0x70] ss:$8 sps:$4 sm:$0xff]   ;;  %v1974_v50 = vld [vmem:[%s2202_s30 + $0x84] ss:$8 sps:$4 sm:$0xff]  }
  0x1d   : > { %1759 = vmatprep.subr.bf16.mxu0 %v2004_v28  ;;  %v1976_v51 = vld [vmem:[%s2202_s30 + $0x80] ss:$8 sps:$4 sm:$0xff]   ;;  %v1977_v52 = vld [vmem:[%s2202_s30 + $0x94] ss:$8 sps:$4 sm:$0xff]   ;;  %v1979_v53 = vld [vmem:[%s2202_s30 + $0x90] ss:$8 sps:$4 sm:$0xff]  }
  0x1e   : > { %1784 = vmatpush3.bf16.msra.mxu1 %v1943_v9  ;;  %v1980_v54 = vld [vmem:[%s2202_s30 + $0xa4] ss:$8 sps:$4 sm:$0xff]   ;;  %v1982_v55 = vld [vmem:[%s2202_s30 + $0xa0] ss:$8 sps:$4 sm:$0xff]   ;;  %v1983_v56 = vld [vmem:[%s2202_s30 + $0xb4] ss:$8 sps:$4 sm:$0xff]  }
  0x1f   : > { %1785 = vmatprep.subr.bf16.mxu1 %v1944_v10  ;;  %v1985_v57 = vld [vmem:[%s2202_s30 + $0xb0] ss:$8 sps:$4 sm:$0xff]   ;;  %v1986_v58 = vld [vmem:[%s2202_s30 + $0xc4] ss:$8 sps:$4 sm:$0xff]   ;;  %v1988_v59 = vld [vmem:[%s2202_s30 + $0xc0] ss:$8 sps:$4 sm:$0xff]  }
  0x20   : > { %1760 = vmatpush3.bf16.msra.mxu0 %v2005_v30  ;;  %v1989_v60 = vld [vmem:[%s2202_s30 + $0xd4] ss:$8 sps:$4 sm:$0xff]   ;;  %v1991_v61 = vld [vmem:[%s2202_s30 + $0xd0] ss:$8 sps:$4 sm:$0xff]   ;;  %v1992_v62 = vld [vmem:[%s2202_s30 + $0xe4] ss:$8 sps:$4 sm:$0xff]  }
  0x21   : > { %1761 = vmatprep.subr.bf16.mxu0 %v2006_v31  ;;  %v1994_v63 = vld [vmem:[%s2202_s30 + $0xe0] ss:$8 sps:$4 sm:$0xff]   ;;  %v1995_v0 = vld [vmem:[%s2202_s30 + $0xf4] ss:$8 sps:$4 sm:$0xff]   ;;  %v1997_v1 = vld [vmem:[%s2202_s30 + $0xf0] ss:$8 sps:$4 sm:$0xff]  }
  0x22   : > { %1786 = vmatpush3.bf16.msra.mxu1 %v1945_v12  ;;  %v2319_v5 = vld [vmem:[%s2465_s6] ss:$0 sm:$0xff] }
  0x23   : > { %1787 = vmatprep.subr.bf16.mxu1 %v1946_v13 }
  0x24   : > { %1762 = vmatpush3.bf16.msra.mxu0 %v2007_v34 }
  0x25   : > { %1763 = vmatprep.subr.bf16.mxu0 %v2008_v35 }
  0x26   : > { %1788 = vmatpush3.bf16.msra.mxu1 %v1947_v14 }
  0x27   : > { %1789 = vmatprep.subr.bf16.mxu1 %v1948_v15 }
  0x28   : > { %1764 = vmatpush3.bf16.msra.mxu0 %v2009_v37 }
  0x29   : > { %1765 = vmatprep.subr.bf16.mxu0 %v2010_v38 }
  0x2a   : > { %1790 = vmatpush3.bf16.msra.mxu1 %v1949_v16 }
  0x2c   : > { %1766 = vmatpush3.bf16.msra.mxu0 %v2011_v39 }
  0x2d   : > { %945 = vmatmul.mubr.bf16.vlgmr.msra.gmra.mxu1 %v1950_v17  ;;  %1767 = vmatprep.subr.bf16.mxu0 %v2012_v41 }
  0x2e   : > { %952 = vmatprep.mubr.bf16.mxu1 %v1953_v18 }
  0x30   : > { %1768 = vmatpush3.bf16.msra.mxu0 %v2013_v43 }
  0x33   : > { %554 = vmatmul.mubr.bf16.vlgmr.msra.gmra.mxu0 %v2014_v44 }
  0x35   : > { %953 = vmatmul.mubr.bf16.gmra.mxu1 %v1955_v19 }
  0x36   : > { %960 = vmatprep.mubr.bf16.mxu1 %v1956_v20 }
  0x3d   : > { %961 = vmatmul.mubr.bf16.gmra.mxu1 %v1958_v26 }
  0x3e   : > { %968 = vmatprep.mubr.bf16.mxu1 %v1959_v29 }
  0x45   : > { %969 = vmatmul.mubr.bf16.gmra.mxu1 %v1961_v32 }
  0x46   : > { %976 = vmatprep.mubr.bf16.mxu1 %v1962_v33 }
  0x4d   : > { %977 = vmatmul.mubr.bf16.gmra.mxu1 %v1964_v40 }
  0x4e   : > { %984 = vmatprep.mubr.bf16.mxu1 %v1965_v42 }
  0x55   : > { %985 = vmatmul.mubr.bf16.gmra.mxu1 %v1967_v45 }
  0x56   : > { %992 = vmatprep.mubr.bf16.mxu1 %v1968_v46 }
  0x5d   : > { %993 = vmatmul.mubr.bf16.gmra.mxu1 %v1970_v47 }
  0x5e   : > { %1000 = vmatprep.mubr.bf16.mxu1 %v1971_v48 }
  0x65   : > { %1001 = vmatmul.mubr.bf16.gmra.mxu1 %v1973_v49 }
  0x66   : > { %1008 = vmatprep.mubr.bf16.mxu1 %v1974_v50 }
  0x6d   : > { %1009 = vmatmul.mubr.bf16.gmra.mxu1 %v1976_v51 }
  0x6e   : > { %1016 = vmatprep.mubr.bf16.mxu1 %v1977_v52 }
  0x75   : > { %1017 = vmatmul.mubr.bf16.gmra.mxu1 %v1979_v53 }
  0x76   : > { %1024 = vmatprep.mubr.bf16.mxu1 %v1980_v54 }
  0x7d   : > { %1025 = vmatmul.mubr.bf16.gmra.mxu1 %v1982_v55 }
  0x7e   : > { %1032 = vmatprep.mubr.bf16.mxu1 %v1983_v56  ;;  %v1637_v56 = vld [vmem:[%s2463_s4] ss:$0 sm:$0xff] }
  0x85   : > { %1033 = vmatmul.mubr.bf16.gmra.mxu1 %v1985_v57 }
  0x86   : > { %1040 = vmatprep.mubr.bf16.mxu1 %v1986_v58 }
  0x8d   : > { %1041 = vmatmul.mubr.bf16.gmra.mxu1 %v1988_v59 }
  0x8e   : > { %1048 = vmatprep.mubr.bf16.mxu1 %v1989_v60 }
  0x95   : > { %1049 = vmatmul.mubr.bf16.gmra.mxu1 %v1991_v61 }
  0x96   : > { %1056 = vmatprep.mubr.bf16.mxu1 %v1992_v62 }
  0x9d   : > { %1057 = vmatmul.mubr.bf16.gmra.mxu1 %v1994_v63 }
  0x9e   : > { %1064 = vmatprep.mubr.bf16.mxu1 %v1995_v0 }
  0xa5   : > { %1065 = vmatmul.mubr.bf16.gmra.mxu1 %v1997_v1 }
  0xed   : > { %v1791_v2 = vpop.f32.mrf.mxu1 }
  0xef   : > { %v1792_v3 = vpop.f32.mrf.mxu1 }
  0xf0   : > { %v1793_v4 = vadd.f32 %v1792_v3, %v1791_v2 }
  0xf1   : > { %v1794_v6 = vpop.f32.mrf.mxu1 }
  0xf2   : > { %v947_v8 = vadd.f32 %v1793_v4, %v2319_v5 }
  0xf3   : > { %v1795_v7 = vpop.f32.mrf.mxu1  ;;  %v1769_v52 = vpop.f32.mrf.mxu0 }
  0xf4   : > { %v1796_v9 = vadd.f32 %v1795_v7, %v1794_v6  ;;  %v1073_v13 = vmax.f32 %v947_v8, 0.0 }
  0xf5   : > { %v1797_v10 = vpop.f32.mrf.mxu1  ;;  %v1770_v57 = vpop.f32.mrf.mxu0 }
  0xf6   : > { %v950_v11 = vadd.f32 %v1796_v9, %v2319_v5  ;;  %v1771_v59 = vadd.f32 %v1770_v57, %v1769_v52 }
  0xf7   : > { %v1798_v12 = vpop.f32.mrf.mxu1  ;;  %v1772_v61 = vpop.f32.mrf.mxu0 }
  0xf8   : > { %v1074_v14 = vmax.f32 %v950_v11, 0.0  ;;  %v1799_v15 = vadd.f32 %v1798_v12, %v1797_v10  ;;  %v556_v1 = vadd.f32 %v1771_v59, %v1637_v56 }
  0xf9   : > { %v1800_v16 = vpop.f32.mrf.mxu1  ;;  %v1773_v3 = vpop.f32.mrf.mxu0 }
  0xfa   : > { %v2323_v17 = vpack.c.bf16 %v1074_v14, %v1073_v13  ;;  %v955_v19 = vadd.f32 %v1799_v15, %v2319_v5  ;;  %v562_v6 = vmax.f32 %v556_v1, 0.0  ;;  %v1774_v7 = vadd.f32 %v1773_v3, %v1772_v61 }
  0xfb   : > { %v1801_v18 = vpop.f32.mrf.mxu1 }
  0xfc   : > { %v1802_v20 = vadd.f32 %v1801_v18, %v1800_v16  ;;  %v1075_v24 = vmax.f32 %v955_v19, 0.0  ;;  %v559_v11 = vadd.f32 %v1774_v7, %v1637_v56  ;;  %v564_v14 = vmul.f32 10.0, %v562_v6 }
  0xfd   : > { %v1803_v21 = vpop.f32.mrf.mxu1 }
  0xfe   : > { %v958_v22 = vadd.f32 %v1802_v20, %v2319_v5  ;;  %v563_v15 = vmax.f32 %v559_v11, 0.0 }
  0xff   : > { %v1804_v23 = vpop.f32.mrf.mxu1 }
 0x100   : > { %v1076_v25 = vmax.f32 %v958_v22, 0.0  ;;  %v1805_v26 = vadd.f32 %v1804_v23, %v1803_v21  ;;  %v565_v21 = vmul.f32 10.0, %v563_v15 }
 0x101   : > { %v1806_v27 = vpop.f32.mrf.mxu1 }
 0x102   : > { %v2327_v28 = vpack.c.bf16 %v1076_v25, %v1075_v24  ;;  %v963_v30 = vadd.f32 %v1805_v26, %v2319_v5  ;;  %v1751_v24 = vpack.c.bf16 %v565_v21, %v564_v14 }
 0x103   : > { %v1807_v29 = vpop.f32.mrf.mxu1 }
 0x104   : > { %v1808_v31 = vadd.f32 %v1807_v29, %v1806_v27  ;;  %v1077_v35 = vmax.f32 %v963_v30, 0.0  ;;  %1752 = vst [vmem:[#allocation2] sm:$0xff] %v1751_v24  }
 0x105   : > { %v1809_v32 = vpop.f32.mrf.mxu1 }
 0x106   : > { %v966_v33 = vadd.f32 %v1808_v31, %v2319_v5 }
 0x107   : > { %v1810_v34 = vpop.f32.mrf.mxu1 }
 0x108   : > { %v1078_v36 = vmax.f32 %v966_v33, 0.0  ;;  %v1811_v37 = vadd.f32 %v1810_v34, %v1809_v32 }
 0x109   : > { %v1812_v38 = vpop.f32.mrf.mxu1 }
 0x10a   : > { %v2331_v39 = vpack.c.bf16 %v1078_v36, %v1077_v35  ;;  %v971_v41 = vadd.f32 %v1811_v37, %v2319_v5 }
 0x10b   : > { %v1813_v40 = vpop.f32.mrf.mxu1 }
 0x10c   : > { %v1814_v42 = vadd.f32 %v1813_v40, %v1812_v38  ;;  %v1079_v46 = vmax.f32 %v971_v41, 0.0  ;;  %v2352_v38 = vld [vmem:[#allocation2] sm:$0xff]  }
 0x10d   : > { %v1815_v43 = vpop.f32.mrf.mxu1  ;;  %1903 = vmatprep.mubr.bf16.mxu0 %v2352_v38 }
 0x10e   : > { %v974_v44 = vadd.f32 %v1814_v42, %v2319_v5 }
 0x10f   : > { %v1816_v45 = vpop.f32.mrf.mxu1 }
 0x110   : > { %v1080_v47 = vmax.f32 %v974_v44, 0.0  ;;  %v1817_v48 = vadd.f32 %v1816_v45, %v1815_v43 }
 0x111   : > { %v1818_v49 = vpop.f32.mrf.mxu1 }
 0x112   : > { %v2335_v50 = vpack.c.bf16 %v1080_v47, %v1079_v46  ;;  %v979_v53 = vadd.f32 %v1817_v48, %v2319_v5 }
 0x113   : > { %v1819_v51 = vpop.f32.mrf.mxu1 }
 0x114   : > { %v1820_v54 = vadd.f32 %v1819_v51, %v1818_v49  ;;  %v1081_v62 = vmax.f32 %v979_v53, 0.0 }
 0x115   : > { %v1821_v55 = vpop.f32.mrf.mxu1 }
 0x116   : > { %v982_v58 = vadd.f32 %v1820_v54, %v2319_v5 }
 0x117   : > { %v1822_v60 = vpop.f32.mrf.mxu1 }
 0x118   : > { %v1082_v63 = vmax.f32 %v982_v58, 0.0  ;;  %v1823_v0 = vadd.f32 %v1822_v60, %v1821_v55 }
 0x119   : > { %v1824_v2 = vpop.f32.mrf.mxu1 }
 0x11a   : > { %v2342_v4 = vpack.c.bf16 %v1082_v63, %v1081_v62  ;;  %v987_v9 = vadd.f32 %v1823_v0, %v2319_v5 }
 0x11b   : > { %v1825_v8 = vpop.f32.mrf.mxu1 }
 0x11c   : > { %v1826_v10 = vadd.f32 %v1825_v8, %v1824_v2  ;;  %v1083_v18 = vmax.f32 %v987_v9, 0.0 }
 0x11d   : > { %v1827_v12 = vpop.f32.mrf.mxu1 }
 0x11e   : > { %v990_v13 = vadd.f32 %v1826_v10, %v2319_v5 }
 0x11f   : > { %v1828_v16 = vpop.f32.mrf.mxu1 }
 0x120   : > { %v1084_v19 = vmax.f32 %v990_v13, 0.0  ;;  %v1829_v20 = vadd.f32 %v1828_v16, %v1827_v12 }
 0x121   : > { %v1830_v22 = vpop.f32.mrf.mxu1 }
 0x122   : > { %v2346_v23 = vpack.c.bf16 %v1084_v19, %v1083_v18  ;;  %v995_v26 = vadd.f32 %v1829_v20, %v2319_v5 }
 0x123   : > { %v1831_v25 = vpop.f32.mrf.mxu1 }
 0x124   : > { %v1832_v27 = vadd.f32 %v1831_v25, %v1830_v22  ;;  %v1085_v32 = vmax.f32 %v995_v26, 0.0 }
 0x125   : > { %v1833_v29 = vpop.f32.mrf.mxu1 }
 0x126   : > { %v998_v30 = vadd.f32 %v1832_v27, %v2319_v5 }
 0x127   : > { %v1834_v31 = vpop.f32.mrf.mxu1 }
 0x128   : > { %v1086_v33 = vmax.f32 %v998_v30, 0.0  ;;  %v1835_v34 = vadd.f32 %v1834_v31, %v1833_v29 }
 0x129   : > { %v1836_v35 = vpop.f32.mrf.mxu1 }
 0x12a   : > { %v2350_v36 = vpack.c.bf16 %v1086_v33, %v1085_v32  ;;  %v1003_v40 = vadd.f32 %v1835_v34, %v2319_v5 }
 0x12b   : > { %v1837_v37 = vpop.f32.mrf.mxu1 }
 0x12c   : > { %v1838_v41 = vadd.f32 %v1837_v37, %v1836_v35  ;;  %v1087_v45 = vmax.f32 %v1003_v40, 0.0 }
 0x12d   : > { %v1839_v42 = vpop.f32.mrf.mxu1 }
 0x12e   : > { %v1006_v43 = vadd.f32 %v1838_v41, %v2319_v5 }
 0x12f   : > { %v1840_v44 = vpop.f32.mrf.mxu1 }
 0x130   : > { %v1088_v46 = vmax.f32 %v1006_v43, 0.0  ;;  %v1841_v47 = vadd.f32 %v1840_v44, %v1839_v42 }
 0x131   : > { %v1842_v48 = vpop.f32.mrf.mxu1 }
 0x132   : > { %v2357_v49 = vpack.c.bf16 %v1088_v46, %v1087_v45  ;;  %v1011_v52 = vadd.f32 %v1841_v47, %v2319_v5 }
 0x133   : > { %v1843_v51 = vpop.f32.mrf.mxu1 }
 0x134   : > { %v1844_v53 = vadd.f32 %v1843_v51, %v1842_v48  ;;  %v1089_v57 = vmax.f32 %v1011_v52, 0.0 }
 0x135   : > { %v1845_v54 = vpop.f32.mrf.mxu1 }
 0x136   : > { %v1014_v55 = vadd.f32 %v1844_v53, %v2319_v5 }
 0x137   : > { %v1846_v56 = vpop.f32.mrf.mxu1 }
 0x138   : > { %v1090_v58 = vmax.f32 %v1014_v55, 0.0  ;;  %v1847_v59 = vadd.f32 %v1846_v56, %v1845_v54 }
 0x139   : > { %v1848_v60 = vpop.f32.mrf.mxu1 }
 0x13a   : > { %v2361_v61 = vpack.c.bf16 %v1090_v58, %v1089_v57  ;;  %v1019_v63 = vadd.f32 %v1847_v59, %v2319_v5 }
 0x13b   : > { %v1849_v62 = vpop.f32.mrf.mxu1 }
 0x13c   : > { %v1850_v0 = vadd.f32 %v1849_v62, %v1848_v60  ;;  %v1091_v6 = vmax.f32 %v1019_v63, 0.0 }
 0x13d   : > { %v1851_v1 = vpop.f32.mrf.mxu1 }
 0x13e   : > { %v1022_v2 = vadd.f32 %v1850_v0, %v2319_v5 }
 0x13f   : > { %v1852_v3 = vpop.f32.mrf.mxu1 }
 0x140   : > { %v1092_v7 = vmax.f32 %v1022_v2, 0.0  ;;  %v1853_v8 = vadd.f32 %v1852_v3, %v1851_v1 }
 0x141   : > { %v1854_v9 = vpop.f32.mrf.mxu1 }
 0x142   : > { %v2365_v10 = vpack.c.bf16 %v1092_v7, %v1091_v6  ;;  %v1027_v12 = vadd.f32 %v1853_v8, %v2319_v5 }
 0x143   : > { %v1855_v11 = vpop.f32.mrf.mxu1 }
 0x144   : > { %v1856_v13 = vadd.f32 %v1855_v11, %v1854_v9  ;;  %v1093_v18 = vmax.f32 %v1027_v12, 0.0 }
 0x145   : > { %v1857_v14 = vpop.f32.mrf.mxu1 }
 0x146   : > { %v1030_v15 = vadd.f32 %v1856_v13, %v2319_v5 }
 0x147   : > { %v1858_v16 = vpop.f32.mrf.mxu1 }
 0x148   : > { %v1094_v19 = vmax.f32 %v1030_v15, 0.0  ;;  %v1859_v13 = vadd.f32 %v1858_v16, %v1857_v14  ;;  %v2021_v14 = vld [vmem:[%s2269_s12 + $0x60] ss:$8 sps:$4 sm:$0xff]   ;;  %v2026_v16 = vld [vmem:[%s2269_s12 + $0x54] ss:$8 sps:$4 sm:$0xff]  }
 0x149   : > { %v1860_v20 = vpop.f32.mrf.mxu1 }
 0x14a   : > { %v1115_v21 = vpack.c.bf16 %v1094_v19, %v1093_v18  ;;  %v1035_v19 = vadd.f32 %v1859_v13, %v2319_v5 }
 0x14b   : > { %v1861_v22 = vpop.f32.mrf.mxu1 }
 0x14c   : > { %v1862_v11 = vadd.f32 %v1861_v22, %v1860_v20  ;;  %v2024_v20 = vld [vmem:[%s2269_s12 + $0x50] ss:$8 sps:$4 sm:$0xff]   ;;  %v2029_v22 = vld [vmem:[%s2269_s12 + $0x44] ss:$8 sps:$4 sm:$0xff]  }
 0x14d   : > { %v1863_v24 = vpop.f32.mrf.mxu1 }
 0x14f   : > { %v1864_v25 = vpop.f32.mrf.mxu1 }
 0x150   : > { %v1865_v3 = vadd.f32 %v1864_v25, %v1863_v24  ;;  %v1095_v25 = vmax.f32 %v1035_v19, 0.0 }
 0x151   : > { %v1866_v26 = vpop.f32.mrf.mxu1 }
 0x152   : > { %v1043_v9 = vadd.f32 %v1865_v3, %v2319_v5 }
 0x153   : > { %v1867_v27 = vpop.f32.mrf.mxu1 }
 0x154   : > { %v1868_v1 = vadd.f32 %v1867_v27, %v1866_v26  ;;  %v1097_v15 = vmax.f32 %v1043_v9, 0.0  ;;  %v2027_v27 = vld [vmem:[%s2269_s12 + $0x40] ss:$8 sps:$4 sm:$0xff]  }
 0x155   : > { %v1869_v29 = vpop.f32.mrf.mxu1 }
 0x156   : > { %v1046_v7 = vadd.f32 %v1868_v1, %v2319_v5  ;;  %v2065_v1 = vld [vmem:[%s2269_s12 + $0x84] ss:$8 sps:$4 sm:$0xff]  }
 0x157   : > { %v1870_v30 = vpop.f32.mrf.mxu1 }
 0x158   : > { %v1871_v58 = vadd.f32 %v1870_v30, %v1869_v29  ;;  %v1098_v12 = vmax.f32 %v1046_v7, 0.0  ;;  %v2032_v29 = vld [vmem:[%s2269_s12 + $0x34] ss:$8 sps:$4 sm:$0xff]   ;;  %v2030_v30 = vld [vmem:[%s2269_s12 + $0x30] ss:$8 sps:$4 sm:$0xff]  }
 0x159   : > { %v1872_v31 = vpop.f32.mrf.mxu1 }
 0x15a   : > { %v1051_v0 = vadd.f32 %v1871_v58, %v2319_v5  ;;  %v1117_v18 = vpack.c.bf16 %v1098_v12, %v1097_v15  ;;  %v2056_v58 = vld [vmem:[%s2269_s12 + $0xb4] ss:$8 sps:$4 sm:$0xff]  }
 0x15b   : > { %v1873_v32 = vpop.f32.mrf.mxu1 }
 0x15c   : > { %v1874_v54 = vadd.f32 %v1873_v32, %v1872_v31  ;;  %v1099_v6 = vmax.f32 %v1051_v0, 0.0  ;;  %v2035_v31 = vld [vmem:[%s2269_s12 + $0x24] ss:$8 sps:$4 sm:$0xff]   ;;  %v2033_v32 = vld [vmem:[%s2269_s12 + $0x20] ss:$8 sps:$4 sm:$0xff]  }
 0x15d   : > { %v1875_v33 = vpop.f32.mrf.mxu1  ;;  %v2060_v0 = vld [vmem:[%s2269_s12 + $0x90] ss:$8 sps:$4 sm:$0xff]  }
 0x15e   : > { %v1054_v62 = vadd.f32 %v1874_v54, %v2319_v5 }
 0x15f   : > { %v1876_v34 = vpop.f32.mrf.mxu1 }
 0x160   : > { %v1877_v45 = vadd.f32 %v1876_v34, %v1875_v33  ;;  %v1100_v2 = vmax.f32 %v1054_v62, 0.0  ;;  %v2038_v33 = vld [vmem:[%s2269_s12 + $0x14] ss:$8 sps:$4 sm:$0xff]   ;;  %v2036_v34 = vld [vmem:[%s2269_s12 + $0x10] ss:$8 sps:$4 sm:$0xff]  }
 0x161   : > { %v1878_v35 = vpop.f32.mrf.mxu1  ;;  %v2057_v62 = vld [vmem:[%s2269_s12 + $0xa0] ss:$8 sps:$4 sm:$0xff]  }
 0x162   : > { %v1059_v52 = vadd.f32 %v1877_v45, %v2319_v5  ;;  %v1118_v8 = vpack.c.bf16 %v1100_v2, %v1099_v6  ;;  %v2050_v45 = vld [vmem:[%s2269_s12 + $0xd4] ss:$8 sps:$4 sm:$0xff]   ;;  %v2063_v2 = vld [vmem:[%s2269_s12 + $0x80] ss:$8 sps:$4 sm:$0xff]  }
 0x163   : > { %v1879_v37 = vpop.f32.mrf.mxu1 }
 0x164   : > { %v1880_v42 = vadd.f32 %v1879_v37, %v1878_v35  ;;  %v1101_v59 = vmax.f32 %v1059_v52, 0.0  ;;  %v2041_v35 = vld [vmem:[%s2269_s12 + $0x4] ss:$8 sps:$4 sm:$0xff]   ;;  %v2039_v37 = vld [vmem:[%s2269_s12] ss:$8 sps:$4 sm:$0xff]  }
 0x165   : > { %v1881_v40 = vpop.f32.mrf.mxu1 }
 0x166   : > { %v1062_v47 = vadd.f32 %v1880_v42, %v2319_v5  ;;  %v2047_v42 = vld [vmem:[%s2269_s12 + $0xe4] ss:$8 sps:$4 sm:$0xff]  }
 0x167   : > { %v1882_v41 = vpop.f32.mrf.mxu1 }
 0x168   : > { %v1883_v43 = vadd.f32 %v1882_v41, %v1881_v40  ;;  %v1102_v55 = vmax.f32 %v1062_v47, 0.0  ;;  %v2044_v40 = vld [vmem:[%s2269_s12 + $0xf4] ss:$8 sps:$4 sm:$0xff]   ;;  %v2042_v41 = vld [vmem:[%s2269_s12 + $0xf0] ss:$8 sps:$4 sm:$0xff]  }
 0x169   : > { %v1884_v44 = vpop.f32.mrf.mxu1  ;;  %v2048_v47 = vld [vmem:[%s2269_s12 + $0xd0] ss:$8 sps:$4 sm:$0xff]  }
 0x16a   : > { %v1067_v48 = vadd.f32 %v1883_v43, %v2319_v5  ;;  %v1119_v63 = vpack.c.bf16 %v1102_v55, %v1101_v59  ;;  %v2045_v43 = vld [vmem:[%s2269_s12 + $0xe0] ss:$8 sps:$4 sm:$0xff]   ;;  %v2054_v59 = vld [vmem:[%s2269_s12 + $0xb0] ss:$8 sps:$4 sm:$0xff]  }
 0x16b   : > { %v1885_v46 = vpop.f32.mrf.mxu1  ;;  %v2051_v55 = vld [vmem:[%s2269_s12 + $0xc0] ss:$8 sps:$4 sm:$0xff]  }
 0x16c   : > { %v1886_v51 = vadd.f32 %v1885_v46, %v1884_v44  ;;  %v1103_v56 = vmax.f32 %v1067_v48, 0.0 }
 0x16e   : > { %v1070_v53 = vadd.f32 %v1886_v51, %v2319_v5 }
 0x170   : > { %v1104_v57 = vmax.f32 %v1070_v53, 0.0  ;;  %v2053_v53 = vld [vmem:[%s2269_s12 + $0xc4] ss:$8 sps:$4 sm:$0xff]  }
 0x172   : > { %v1120_v60 = vpack.c.bf16 %v1104_v57, %v1103_v56 }
 0x174   : > { %1887 = vmatprep.subr.bf16.mxu0 %v1120_v60  ;;  %v2059_v60 = vld [vmem:[%s2269_s12 + $0xa4] ss:$8 sps:$4 sm:$0xff]  }
 0x175   : > { %1888 = vmatpush3.bf16.xpose.msra.mxu0 %v2357_v49  ;;  %v1038_v49 = vadd.f32 %v1862_v11, %v2319_v5  ;;  %v2106_v5 = vmov -inf  }
 0x176   : > { %1889 = vmatprep.subr.bf16.mxu0 %v1119_v63  ;;  %577 = vst.msk [vmem:[#allocation3] sm:$0xff] %vm576_vm0, %v2106_v5  ;;  %578 = vst.msk [vmem:[#allocation3 + $0x8] sm:$0xff] %vm576_vm0, %v2106_v5  ;;  %v2062_v63 = vld [vmem:[%s2269_s12 + $0x94] ss:$8 sps:$4 sm:$0xff]  }
 0x177   : > { %v1096_v24 = vmax.f32 %v1038_v49, 0.0 }
 0x179   : > { %v1116_v26 = vpack.c.bf16 %v1096_v24, %v1095_v25 }
 0x17d   : > { %1890 = vmatpush3.bf16.xpose.msra.mxu0 %v2350_v36  ;;  %v2107_v36 = vmov 0   ;;  %v1172_v44 = vld [vmem:[#allocation3] sm:$0xff]  ;;  %v1173_v51 = vld [vmem:[#allocation3 + $0x8] sm:$0xff] }
 0x17e   : > { %1891 = vmatprep.subr.bf16.mxu0 %v1118_v8  ;;  %1932 = vset.pattern.permute.xlu1 %v2107_v36 }
 0x17f   : > { %1933 = vset.pattern.permute.xlu0 %v2107_v36 }
 0x185   : > { %1892 = vmatpush3.bf16.xpose.msra.mxu0 %v2346_v23 }
 0x186   : > { %1893 = vmatprep.subr.bf16.mxu0 %v1117_v18 }
 0x18d   : > { %1894 = vmatpush3.bf16.xpose.msra.mxu0 %v2342_v4 }
 0x18e   : > { %1895 = vmatprep.subr.bf16.mxu0 %v1116_v26 }
 0x195   : > { %1896 = vmatpush3.bf16.xpose.msra.mxu0 %v2335_v50 }
 0x196   : > { %1897 = vmatprep.subr.bf16.mxu0 %v1115_v21  ;;  %v2108_v21 = vmov 0.0  }
 0x197   : > { %579 = vst.msk [vmem:[#allocation4] sm:$0xff] %vm576_vm0, %v2108_v21  ;;  %580 = vst.msk [vmem:[#allocation4 + $0x8] sm:$0xff] %vm576_vm0, %v2108_v21 }
 0x19d   : > { %1898 = vmatpush3.bf16.xpose.msra.mxu0 %v2331_v39 }
 0x19e   : > { %1899 = vmatprep.subr.bf16.mxu0 %v2365_v10  ;;  %v2023_v10 = vld [vmem:[%s2269_s12 + $0x64] ss:$8 sps:$4 sm:$0xff]   ;;  %v1210_v36 = vld [vmem:[#allocation4] sm:$0xff] }
 0x1a5   : > { %1900 = vmatpush3.bf16.xpose.msra.mxu0 %v2327_v28 }
 0x1a6   : > { %1901 = vmatprep.subr.bf16.mxu0 %v2361_v61  ;;  %v2020_v61 = vld [vmem:[%s2269_s12 + $0x74] ss:$8 sps:$4 sm:$0xff]  }
 0x1ad   : > { %1902 = vmatpush3.bf16.xpose.msra.mxu0 %v2323_v17 }
 0x1ae   : > { %1437 = vmatprep.subr.bf16.mxu0 %v2020_v61 }
 0x1b4   : > { %1904 = vmatmul.mubr.bf16.vlgmr.msra.gmra.mxu0 %v2352_v38  ;;  %v2018_v38 = vld [vmem:[%s2269_s12 + $0x70] ss:$8 sps:$4 sm:$0xff]   ;;  %s1745_s12 = sshll.u32 %s2472_s24, 5 }
 0x1b5   : > { %1438 = vmatpush1.bf16.msra.mxu0 %v2018_v38  ;;  %s368_s15 = scalar_lea.vmem %s2466_s7, %s1745_s12 }
 0x1b6   : > { %1439 = vmatprep.subr.bf16.mxu0 %v2023_v10  ;;  %v1211_v10 = vld [vmem:[#allocation4 + $0x8] sm:$0xff] }
 0x1b9   : > { %1440 = vmatpush1.bf16.msra.mxu0 %v2021_v14 }
 0x1ba   : > { %1441 = vmatprep.subr.bf16.mxu0 %v2026_v16 }
 0x1bd   : > { %1442 = vmatpush1.bf16.msra.mxu0 %v2024_v20 }
 0x1be   : > { %1443 = vmatprep.subr.bf16.mxu0 %v2029_v22 }
 0x1c1   : > { %1444 = vmatpush1.bf16.msra.mxu0 %v2027_v27 }
 0x1c2   : > { %1445 = vmatprep.subr.bf16.mxu0 %v2032_v29 }
 0x1c5   : > { %1446 = vmatpush1.bf16.msra.mxu0 %v2030_v30 }
 0x1c6   : > { %1447 = vmatprep.subr.bf16.mxu0 %v2035_v31 }
 0x1c9   : > { %1448 = vmatpush1.bf16.msra.mxu0 %v2033_v32 }
 0x1ca   : > { %1449 = vmatprep.subr.bf16.mxu0 %v2038_v33 }
 0x1cd   : > { %1450 = vmatpush1.bf16.msra.mxu0 %v2036_v34 }
 0x1ce   : > { %1451 = vmatprep.subr.bf16.mxu0 %v2041_v35 }
 0x1d1   : > { %1452 = vmatpush1.bf16.msra.mxu0 %v2039_v37 }
 0x1d2   : > { %1453 = vmatprep.subr.bf16.mxu0 %v2044_v40 }
 0x1d5   : > { %1454 = vmatpush2.bf16.msra.mxu0 %v2042_v41 }
 0x1d6   : > { %1455 = vmatprep.subr.bf16.mxu0 %v2047_v42 }
 0x1d9   : > { %1456 = vmatpush2.bf16.msra.mxu0 %v2045_v43 }
 0x1da   : > { %1457 = vmatprep.subr.bf16.mxu0 %v2050_v45 }
 0x1dd   : > { %1458 = vmatpush2.bf16.msra.mxu0 %v2048_v47 }
 0x1de   : > { %1459 = vmatprep.subr.bf16.mxu0 %v2053_v53 }
 0x1e1   : > { %1460 = vmatpush2.bf16.msra.mxu0 %v2051_v55 }
 0x1e2   : > { %1461 = vmatprep.subr.bf16.mxu0 %v2056_v58 }
 0x1e5   : > { %1462 = vmatpush2.bf16.msra.mxu0 %v2054_v59 }
 0x1e6   : > { %1463 = vmatprep.subr.bf16.mxu0 %v2059_v60 }
 0x1e9   : > { %1464 = vmatpush2.bf16.msra.mxu0 %v2057_v62 }
 0x1ea   : > { %1465 = vmatprep.subr.bf16.mxu0 %v2062_v63 }
 0x1ed   : > { %1466 = vmatpush2.bf16.msra.mxu0 %v2060_v0 }
 0x1ee   : > { %1467 = vmatprep.subr.bf16.mxu0 %v2065_v1 }
 0x1f1   : > { %1468 = vmatpush2.bf16.msra.mxu0 %v2063_v2 }
 0x274   : > { %v2392_v39 = vpop.f32.mrf.mxu0 }
 0x276   : > { %v2394_v50 = vpop.f32.mrf.mxu0 }
 0x277   : > { %v1174_v28 = vmax.f32 %v2392_v39, %v2394_v50 }
 0x278   : > { %v2398_v17 = vpop.f32.mrf.mxu0 }
 0x279   : > { %1175 = vmax.xlane.f32.xlu0 %v1174_v28 }
 0x27a   : > { %v2400_v4 = vpop.f32.mrf.mxu0 }
 0x27b   : > { %v1177_v23 = vmax.f32 %v2398_v17, %v2400_v4 }
 0x27d   : > { %1178 = vmax.xlane.f32.xlu0 %v1177_v23 }
 0x302   : > { %v1176_v46 = vpop.xlane.xlu0 %1175 }
 0x303   : > { %v1180_v48 = vmax.f32 %v1172_v44, %v1176_v46 }
 0x305   : > { %v1182_v52 = vsub.f32 %v1172_v44, %v1180_v48  ;;  %1488 = vst.msk [vmem:[#allocation3] sm:$0xff] %vm576_vm0, %v1180_v48  ;;  %1190 = vperm.xlu1 %1932, %v1180_v48  }
 0x306   : > { %v1179_v54 = vpop.xlane.xlu0 %1178 }
 0x307   : > { %v1181_v56 = vmax.f32 %v1173_v51, %v1179_v54  ;;  %v1184_v23 = vmul.f32 1.442695, %v1182_v52 }
 0x309   : > { %v1183_v57 = vsub.f32 %v1173_v51, %v1181_v56  ;;  %1489 = vst.msk [vmem:[#allocation3 + $0x8] sm:$0xff] %vm576_vm0, %v1181_v56  ;;  %1195 = vperm.xlu1 %1932, %v1181_v56  }
 0x30b   : > { %v1186_v28 = vmul.f32 1.442695, %v1183_v57 }
 0x380   : > { %v1191_v3 = vpop.permute.xlu1 %1190 }
 0x381   : > { %v1198_v6 = vsub.f32 %v2392_v39, %v1191_v3  ;;  %v1199_v7 = vsub.f32 %v2394_v50, %v1191_v3 }
 0x383   : > { %v1202_v8 = vmul.f32 1.442695, %v1198_v6  ;;  %v1204_v9 = vmul.f32 1.442695, %v1199_v7 }
 0x384   : > { %v1196_v11 = vpop.permute.xlu1 %1195 }
 0x385   : > { %2066 = vpow2.f32 %v1202_v8  ;;  %v1200_v12 = vsub.f32 %v2398_v17, %v1196_v11  ;;  %v1201_v13 = vsub.f32 %v2400_v4, %v1196_v11 }
 0x386   : > { %2068 = vpow2.f32 %v1204_v9 }
 0x387   : > { %v1206_v15 = vmul.f32 1.442695, %v1200_v12  ;;  %v1208_v49 = vmul.f32 1.442695, %v1201_v13 }
 0x389   : > { %2070 = vpow2.f32 %v1206_v15 }
 0x38a   : > { %2072 = vpow2.f32 %v1208_v49 }
 0x38b   : > { %2074 = vpow2.f32 %v1186_v28 }
 0x38c   : > { %2076 = vpow2.f32 %v1184_v23 }
 0x392   : > { %v2067_v18 = vpop.eup %2066 }
 0x393   : > { %v2069_v19 = vpop.eup %2068 }
 0x394   : > { %v1214_v24 = vadd.f32 %v2069_v19, %v2067_v18 }
 0x396   : > { %v2071_v25 = vpop.eup %2070  ;;  %1215 = vadd.xlane.f32.xlu0 %v1214_v24 }
 0x397   : > { %v2073_v26 = vpop.eup %2072  ;;  %v1243_v5 = vpack.c.bf16 %v2071_v25, %v2067_v18 }
 0x398   : > { %v1244_v39 = vpack.c.bf16 %v2073_v26, %v2069_v19  ;;  %v1217_v50 = vadd.f32 %v2073_v26, %v2071_v25  ;;  %v2075_v17 = vpop.eup %2074 }
 0x399   : > { %v2077_v4 = vpop.eup %2076  ;;  %v1213_v16 = vmul.f32 %v2075_v17, %v1211_v10 }
 0x39a   : > { %1469 = vmatprep.mubr.bf16.mxu0 %v1244_v39  ;;  %1218 = vadd.xlane.f32.xlu1 %v1217_v50  ;;  %v1212_v38 = vmul.f32 %v2077_v4, %v1210_v36 }
 0x39b   : > { %1470 = vmatmul.mubr.bf16.vlgmr.msra.gmra.mxu0 %v1243_v5 }
 0x3ab   : > { %1236 = vperm.xlu1 %1932, %v2075_v17  }
 0x3ac   : > { %1231 = vperm.xlu0 %1933, %v2077_v4  }
 0x41f   : > { %v1216_v61 = vpop.xlane.xlu0 %1215 }
 0x420   : > { %v1220_v14 = vadd.f32 %v1216_v61, %v1212_v38 }
 0x422   : > { %1223 = vst.msk [vmem:[#allocation4] sm:$0xff] %vm576_vm0, %v1220_v14 }
 0x423   : > { %v1219_v20 = vpop.xlane.xlu1 %1218 }
 0x424   : > { %v1221_v21 = vadd.f32 %v1219_v20, %v1213_v16 }
 0x426   : > { %1224 = vst.msk [vmem:[#allocation4 + $0x8] sm:$0xff] %vm576_vm0, %v1221_v21 }
 0x427   : > { %v1232_v33 = vpop.permute.xlu0 %1231  ;;  %v1237_v37 = vpop.permute.xlu1 %1236 }
 0x428   : > { %v1239_v35 = vmul.f32 0.0, %v1232_v33  ;;  %v1241_v44 = vmul.f32 0.0, %v1237_v37 }
 0x429   : > { %v1497_v22 = vld [vmem:[#allocation4] sm:$0xff] }
 0x42a   : > { %2078 = vrcp.f32 %v1497_v22 }
 0x42d   : > { %v1498_v27 = vld [vmem:[#allocation4 + $0x8] sm:$0xff] }
 0x42e   : > { %2080 = vrcp.f32 %v1498_v27 }
 0x437   : > { %v2079_v29 = vpop.eup %2078 }
 0x438   : > { %1503 = vperm.xlu0 %1933, %v2079_v29  }
 0x43b   : > { %v2081_v30 = vpop.eup %2080 }
 0x43c   : > { %1508 = vperm.xlu0 %1933, %v2081_v30  }
 0x45b   : > { %v1471_v31 = vpop.f32.mrf.mxu0 }
 0x45c   : > { %v1480_v40 = vadd.f32 %v1471_v31, %v1239_v35 }
 0x45d   : > { %v1473_v32 = vpop.f32.mrf.mxu0 }
 0x45e   : > { %v1481_v41 = vadd.f32 %v1473_v32, %v1239_v35 }
 0x45f   : > { %v1475_v34 = vpop.f32.mrf.mxu0 }
 0x460   : > { %v1482_v47 = vadd.f32 %v1475_v34, %v1241_v44 }
 0x461   : > { %v1477_v42 = vpop.f32.mrf.mxu0 }
 0x462   : > { %v1483_v48 = vadd.f32 %v1477_v42, %v1241_v44 }
 0x4b3   : > { %v1504_v43 = vpop.permute.xlu0 %1503 }
 0x4b4   : > { %v1511_v45 = vmul.f32 %v1504_v43, %v1480_v40  ;;  %v1512_v46 = vmul.f32 %v1504_v43, %v1481_v41 }
 0x4b6   : > { %1515 = vst [vmem:[%s368_s15] sm:$0xff] %v1511_v45  ;;  %1516 = vst [vmem:[%s368_s15 + $0x8] sm:$0xff] %v1512_v46 }
 0x4b7   : > { %v1509_v51 = vpop.permute.xlu0 %1508 }
 0x4b8   : > { %v1513_v52 = vmul.f32 %v1509_v51, %v1482_v47  ;;  %v1514_v53 = vmul.f32 %v1509_v51, %v1483_v48 }
 0x4ba   : > { %1517 = vst [vmem:[%s368_s15 + $0x10] sm:$0xff] %v1513_v52  ;;  %1518 = vst [vmem:[%s368_s15 + $0x18] sm:$0xff] %v1514_v53 }
 0x4bb PF: > { %s17_s26 = sadd.s32 1, %s2104_s26   ;;  %s2467_s24 = smov %s2100_s25 }
 0x4bc   : > { %p14_p5 = scmp.ge.s32.totalorder %s17_s26, 4   ;;  %s2468_s25 = smov %s2470_s27 }
 0x4be   :  { %16 = sbr.rel (!%p14_p5) target bundleno = 2 (0x2), region = 92 }

</bundles_post_ra>
